<compile_context>
chip_gen: v7x
topology: tpu7x:2x2x1
jax: 0.10.0
libtpu: 0.0.40
codegen_flags: <defaults>
</compile_context>

<pallas_src>
import math

import jax
import jax.numpy as jnp
from jax.experimental import pallas as pl
from jax.experimental.pallas import tpu as pltpu


def _make_prol_kernel(sg, c_in, hw):
    """Builds the kernel for fixed (sg, C, H*W). All loops are static/unrolled."""
    cg = c_in // sg        # input channels per group
    cpg = c_in             # output channels per group (= in_channels)
    use_mxu = cg >= 64     # only use the MXU when the contraction is big enough

    def kernel(x_ref, w_ref, b_ref, o_ref):
        # x_ref: (1, C, HW)   w_ref: (C*sg, Cg)   b_ref: (C*sg, 1)   o_ref: (1, C*sg, HW)
        x = x_ref[0]                    # (C, HW)
        w = w_ref[...]                  # (C*sg, Cg)   resident across grid steps
        b = b_ref[...]                  # (C*sg, 1)    resident across grid steps

        outs = []
        for g in range(sg):             # sg is tiny -> static unroll
            wg = w[g * cpg:(g + 1) * cpg, :]        # (cpg, cg)
            bg = b[g * cpg:(g + 1) * cpg, :]        # (cpg, 1)
            xg = x[g * cg:(g + 1) * cg, :]          # (cg, hw)
            if use_mxu:
                y = jnp.dot(wg, xg, preferred_element_type=jnp.float32) + bg
            else:
                # VPU broadcast-FMA: (cpg,1) * (1,hw) accumulated cg times.
                y = wg[:, 0:1] * xg[0:1, :] + bg
                for d in range(1, cg):
                    y = y + wg[:, d:d + 1] * xg[d:d + 1, :]
            outs.append(y)

        full = outs[0] if sg == 1 else jnp.concatenate(outs, axis=0)  # (C*sg, HW)
        o_ref[0] = full.astype(o_ref.dtype)   # single full-tile store

    return kernel


def prol2d_pallas(x, weight, bias, sg):
    """x: (N, C, H, W); weight: (C*sg, C//sg, 1, 1); bias: (C*sg,)."""
    N, C, H, W = x.shape
    Cg = C // sg
    HW = H * W
    out_ch = C * sg

    # Glue reshapes (plain JAX, no data movement beyond layout).
    x_f = x.reshape(N, C, HW)                 # (N, C, HW)
    w_f = weight.reshape(out_ch, Cg)          # (C*sg, Cg)
    b_f = bias.reshape(out_ch, 1)             # (C*sg, 1)

    kernel = _make_prol_kernel(sg, C, HW)

    out = pl.pallas_call(
        kernel,
        out_shape=jax.ShapeDtypeStruct((N, out_ch, HW), x.dtype),
        grid_spec=pltpu.PrefetchScalarGridSpec(
            num_scalar_prefetch=0,
            grid=(N,),
            in_specs=[
                # per-batch input tile
                pl.BlockSpec((1, C, HW), lambda n: (n, 0, 0)),
                # full-array, constant-index -> DMA'd once, resident in VMEM
                pl.BlockSpec((out_ch, Cg), lambda n: (0, 0)),
                pl.BlockSpec((out_ch, 1), lambda n: (0, 0)),
            ],
            out_specs=pl.BlockSpec((1, out_ch, HW), lambda n: (n, 0, 0)),
        ),
        compiler_params=pltpu.CompilerParams(
            dimension_semantics=("parallel",),   # N axis can shard across TCs (v7x)
        ),
    )(x_f, w_f, b_f)

    # (N, C*sg, HW) -> (N, C*sg, H, W); channel order already matches PyTorch.
    return out.reshape(N, out_ch, H, W)


def init_prol2d_params(key, in_channels, sg, dtype=jnp.float32):
    """Deterministic init mimicking nn.Conv2d defaults (kaiming-uniform-ish)."""
    Cg = in_channels // sg
    out_channels = in_channels * sg
    fan_in = Cg * 1 * 1
    k_w, k_b = jax.random.split(key)
    bound_w = math.sqrt(1.0 / fan_in) * math.sqrt(3.0)   # kaiming_uniform(a=sqrt(5))
    weight = jax.random.uniform(
        k_w, (out_channels, Cg, 1, 1), dtype, minval=-bound_w, maxval=bound_w)
    bound_b = 1.0 / math.sqrt(fan_in)
    bias = jax.random.uniform(
        k_b, (out_channels,), dtype, minval=-bound_b, maxval=bound_b)
    return weight, bias


def prol2d_reference(x, weight, bias, sg):
    """Independent reference: XLA grouped conv, exact PyTorch semantics."""
    out = jax.lax.conv_general_dilated(
        x, weight, window_strides=(1, 1), padding="VALID",
        dimension_numbers=("NCHW", "OIHW", "NCHW"),
        feature_group_count=sg)
    return out + bias.reshape(1, -1, 1, 1)


if __name__ == "__main__":
    key = jax.random.PRNGKey(0)
    k_x, k_p = jax.random.split(key)

    N, C, H, W = 2, 4, 16, 16
    sg = 2

    x = jax.random.normal(k_x, (N, C, H, W), dtype=jnp.float32)
    weight, bias = init_prol2d_params(k_p, C, sg)

    out = prol2d_pallas(x, weight, bias, sg)
    out = jax.block_until_ready(out)

    ref = prol2d_reference(x, weight, bias, sg)
    assert out.shape == (N, C * sg, H, W), out.shape
    assert jnp.allclose(out, ref, atol=1e-5, rtol=1e-5), "mismatch vs reference"

    print("KERNEL_OK")
</pallas_src>

<mosaic_0001>
module attributes {stable_mosaic.version = 11 : i64} {
  func.func @kernel(%arg0: i32, %arg1: memref<1x4x256xf32, #tpu.memory_space<vmem>>, %arg2: memref<8x2xf32, #tpu.memory_space<vmem>>, %arg3: memref<8x1xf32, #tpu.memory_space<vmem>>, %arg4: memref<1x8x256xf32, #tpu.memory_space<vmem>>) attributes {dimension_semantics = [#tpu.dimension_semantics<parallel>], iteration_bounds = array<i64: 2>, scalar_prefetch = 0 : i64, scratch_operands = 0 : i64, tpu.core_type = #tpu.core_type<tc>, window_params = [{transform_indices = @transform_0, window_bounds = array<i64: 1, 4, 256>}, {pipeline_mode = #tpu.pipeline_mode<synchronous>, transform_indices = @transform_1, window_bounds = array<i64: 8, 2>}, {pipeline_mode = #tpu.pipeline_mode<synchronous>, transform_indices = @transform_2, window_bounds = array<i64: 8, 1>}, {transform_indices = @transform_3, window_bounds = array<i64: 1, 8, 256>}]} {
    %c0 = arith.constant 0 : index
    %c0_0 = arith.constant 0 : index
    %c0_1 = arith.constant 0 : index
    %0 = vector.load %arg1[%c0, %c0_0, %c0_1] : memref<1x4x256xf32, #tpu.memory_space<vmem>>, vector<1x4x256xf32>
    %1 = vector.shape_cast %0 : vector<1x4x256xf32> to vector<4x256xf32>
    %c0_2 = arith.constant 0 : index
    %c0_3 = arith.constant 0 : index
    %2 = vector.load %arg2[%c0_2, %c0_3] : memref<8x2xf32, #tpu.memory_space<vmem>>, vector<8x2xf32>
    %c0_4 = arith.constant 0 : index
    %c0_5 = arith.constant 0 : index
    %3 = vector.load %arg3[%c0_4, %c0_5] : memref<8x1xf32, #tpu.memory_space<vmem>>, vector<8x1xf32>
    %4 = vector.extract_strided_slice %2 {offsets = [0, 0], sizes = [4, 2], strides = [1, 1]} : vector<8x2xf32> to vector<4x2xf32>
    %5 = vector.extract_strided_slice %3 {offsets = [0, 0], sizes = [4, 1], strides = [1, 1]} : vector<8x1xf32> to vector<4x1xf32>
    %6 = vector.extract_strided_slice %1 {offsets = [0, 0], sizes = [2, 256], strides = [1, 1]} : vector<4x256xf32> to vector<2x256xf32>
    %7 = vector.extract_strided_slice %4 {offsets = [0, 0], sizes = [4, 1], strides = [1, 1]} : vector<4x2xf32> to vector<4x1xf32>
    %8 = vector.extract_strided_slice %6 {offsets = [0, 0], sizes = [1, 256], strides = [1, 1]} : vector<2x256xf32> to vector<1x256xf32>
    %9 = vector.broadcast %7 : vector<4x1xf32> to vector<4x256xf32>
    %10 = vector.broadcast %8 : vector<1x256xf32> to vector<4x256xf32>
    %11 = arith.mulf %9, %10 : vector<4x256xf32>
    %12 = vector.broadcast %5 : vector<4x1xf32> to vector<4x256xf32>
    %13 = arith.addf %11, %12 : vector<4x256xf32>
    %14 = vector.extract_strided_slice %4 {offsets = [0, 1], sizes = [4, 1], strides = [1, 1]} : vector<4x2xf32> to vector<4x1xf32>
    %15 = vector.extract_strided_slice %6 {offsets = [1, 0], sizes = [1, 256], strides = [1, 1]} : vector<2x256xf32> to vector<1x256xf32>
    %16 = vector.broadcast %14 : vector<4x1xf32> to vector<4x256xf32>
    %17 = vector.broadcast %15 : vector<1x256xf32> to vector<4x256xf32>
    %18 = arith.mulf %16, %17 : vector<4x256xf32>
    %19 = arith.addf %13, %18 : vector<4x256xf32>
    %20 = vector.extract_strided_slice %2 {offsets = [4, 0], sizes = [4, 2], strides = [1, 1]} : vector<8x2xf32> to vector<4x2xf32>
    %21 = vector.extract_strided_slice %3 {offsets = [4, 0], sizes = [4, 1], strides = [1, 1]} : vector<8x1xf32> to vector<4x1xf32>
    %22 = vector.extract_strided_slice %1 {offsets = [2, 0], sizes = [2, 256], strides = [1, 1]} : vector<4x256xf32> to vector<2x256xf32>
    %23 = vector.extract_strided_slice %20 {offsets = [0, 0], sizes = [4, 1], strides = [1, 1]} : vector<4x2xf32> to vector<4x1xf32>
    %24 = vector.extract_strided_slice %22 {offsets = [0, 0], sizes = [1, 256], strides = [1, 1]} : vector<2x256xf32> to vector<1x256xf32>
    %25 = vector.broadcast %23 : vector<4x1xf32> to vector<4x256xf32>
    %26 = vector.broadcast %24 : vector<1x256xf32> to vector<4x256xf32>
    %27 = arith.mulf %25, %26 : vector<4x256xf32>
    %28 = vector.broadcast %21 : vector<4x1xf32> to vector<4x256xf32>
    %29 = arith.addf %27, %28 : vector<4x256xf32>
    %30 = vector.extract_strided_slice %20 {offsets = [0, 1], sizes = [4, 1], strides = [1, 1]} : vector<4x2xf32> to vector<4x1xf32>
    %31 = vector.extract_strided_slice %22 {offsets = [1, 0], sizes = [1, 256], strides = [1, 1]} : vector<2x256xf32> to vector<1x256xf32>
    %32 = vector.broadcast %30 : vector<4x1xf32> to vector<4x256xf32>
    %33 = vector.broadcast %31 : vector<1x256xf32> to vector<4x256xf32>
    %34 = arith.mulf %32, %33 : vector<4x256xf32>
    %35 = arith.addf %29, %34 : vector<4x256xf32>
    %36 = tpu.concatenate %19, %35 in 0 : vector<4x256xf32>, vector<4x256xf32> -> vector<8x256xf32>
    %c0_6 = arith.constant 0 : index
    %c0_7 = arith.constant 0 : index
    %c0_8 = arith.constant 0 : index
    %37 = vector.load %arg4[%c0_6, %c0_7, %c0_8] : memref<1x8x256xf32, #tpu.memory_space<vmem>>, vector<1x8x256xf32>
    %38 = vector.shape_cast %37 : vector<1x8x256xf32> to vector<8x256xf32>
    %39 = vector.shape_cast %36 : vector<8x256xf32> to vector<1x8x256xf32>
    tpu.vector_store %arg4[%c0_6, %c0_7, %c0_8], %39 {strides = array<i32>} : memref<1x8x256xf32, #tpu.memory_space<vmem>>, vector<1x8x256xf32>,
    return
  }
  func.func @transform_0(%arg0: i32) -> (i32, i32, i32) {
    %c0_i32 = arith.constant 0 : i32
    %c0_i32_0 = arith.constant 0 : i32
    %c0_i32_1 = arith.constant 0 : i32
    return %arg0, %c0_i32, %c0_i32_0 : i32, i32, i32
  }
  func.func @transform_1(%arg0: i32) -> (i32, i32) {
    %c0_i32 = arith.constant 0 : i32
    %c0_i32_0 = arith.constant 0 : i32
    %c0_i32_1 = arith.constant 0 : i32
    return %c0_i32, %c0_i32_0 : i32, i32
  }
  func.func @transform_2(%arg0: i32) -> (i32, i32) {
    %c0_i32 = arith.constant 0 : i32
    %c0_i32_0 = arith.constant 0 : i32
    %c0_i32_1 = arith.constant 0 : i32
    return %c0_i32, %c0_i32_0 : i32, i32
  }
  func.func @transform_3(%arg0: i32) -> (i32, i32, i32) {
    %c0_i32 = arith.constant 0 : i32
    %c0_i32_0 = arith.constant 0 : i32
    %c0_i32_1 = arith.constant 0 : i32
    return %arg0, %c0_i32, %c0_i32_0 : i32, i32, i32
  }
}

</mosaic_0001>

<bundles_post_ra>
// kernel: tpu_custom_call.1
= control target key start
LH: loop header
LB: loop body
LE: loop exit
PB: predicated region body
PF: predicated region fallthrough
CT: control target
= control target key end

     0   :  { %8 = vsyncpa [#allocation3], 0  ;;  %s609_s0 = inlined_call_operand.vmem [shape: f32[2,4,256], index: 0, kind: input, shape index: {}]   ;;  %s610_s1 = inlined_call_operand.vmem [shape: f32[8,2], index: 1, kind: input, shape index: {}]   ;;  %s611_s2 = inlined_call_operand.vmem [shape: f32[8,1], index: 2, kind: input, shape index: {}]   ;;  %s612_s3 = inlined_call_operand.hbm [shape: f32[2,8,256], index: 3, kind: output, shape index: {}]  }
   0x1   :  { %10 = vsyncpa [#allocation3 + $0x1], 0  ;;  %s499_s12 = smov 0   ;;  %s501_s13 = smov 0  }
   0x2   :  { %s503_s14 = smov 0   ;;  %s505_s15 = smov 0  }
   0x3 LB: > { %s520_s16 = sadd.s32 4294967295, %s474_s15   ;;  %s354_s17 = sadd.s32 4294967294, %s474_s15   ;;  %s474_s15 = sphi %s505_s15, %s618_s15   ;;  %s470_s14 = sphi %s503_s14, %s617_s14   ;;  %s466_s13 = sphi %s501_s13, %s616_s13   ;;  %s462_s12 = sphi %s499_s12, %s615_s12  }
   0x4   : > { %s524_s18 = sadd.s32 1, %s474_s15   ;;  %s91_s19 = sadd.s32 1, %s470_s14 }
   0x5   : > { %s88_s20 = ssub.s32 %s474_s15, %s524_s18  ;;  %p101_p0 = scmp.ne.s32.totalorder %s470_s14, %s466_s13 }
   0x6   : > { %p89_p1 = scmp.eq.s32.totalorder %s88_s20, 0  ;;  %p102_p2 = scmp.eq.s32.totalorder %s520_s16, 1 }
   0x7   : > { %p107_p3 = scmp.ne.s32.totalorder %s466_s13, %s462_s12  ;;  %p108_p4 = scmp.eq.s32.totalorder %s354_s17, 1 }
   0x8   : > { %s535_s21 = scalar_select %p89_p1, %s470_s14, %s91_s19  }
   0x9   : > { %p537_p5 = por %p102_p2, %p101_p0  ;;  %p541_p6 = por %p108_p4, %p107_p3 }
   0xa   : > { %p357_p7 = scmp.ge.s32.totalorder %s474_s15, 1  ;;  %p140_p8 = scmp.lt.s32.totalorder %s474_s15, 3 }
   0xc   : > { %p141_p9 = pnand %p357_p7, %p140_p8 }
   0xd   : > { %v170_v0 = vld [vmem:[%s610_s1] sm:$0xff] (!%p141_p9)  ;;  %v476_v1 = vmov (!%p141_p9), 0   ;;  %v477_v2 = vmov (!%p141_p9), 1   ;;  %p164_p10 = scmp.lt.s32.totalorder (!%p141_p9), %s520_s16, 1  ;;  %v178_v4 = vlaneseq (!%p141_p9)  ;;  %s161_s6 = sand.u32 (!%p141_p9), 1, %s466_s13   ;;  %vm275_vm0 = vcmask (!%p141_p9), 1043456  }
   0xe   : > { %144 = sbr.rel (%p141_p9) target bundleno = 166 (0xa6), region = 32  ;;  %409 = vset.pattern.permute.xlu0 (!%p141_p9), %v476_v1  ;;  %410 = vset.pattern.permute.xlu1 (!%p141_p9), %v477_v2  ;;  %v171_v3 = vld [vmem:[%s611_s2] sm:$0xff] (!%p141_p9)  ;;  %s358_s7 = sshll.u32 (!%p141_p9), %s161_s6, 4 }
   0xf   : > { %174 = vperm.xlu0 (!%p141_p9), %409, %v170_v0   ;;  %206 = vperm.xlu1 (!%p141_p9), %410, %v170_v0   ;;  %v179_v5 = vshrl.u32 (!%p141_p9), %v178_v4, 7  ;;  %s367_s8 = sshll.u32 (!%p141_p9), %s520_s16, 8  ;;  %s163_s9 = scalar_lea.vmem (!%p141_p9), [#allocation2], %s358_s7 }
  0x10   : > { %s295_s10 = sshll.u32 (!%p141_p9), %s163_s9, 4  ;;  %s565_s19 = scalar_lea.hbm (!%p141_p9), %s612_s3, %s367_s8  ;;  %s567_s10 = int_to_ptr.vmem [resolvable:$true] %s295_s10 }
  0x11   : > { %v211_v6 = vsub.s32 (!%p141_p9), 1, %v179_v5  ;;  %v215_v7 = vsub.s32 (!%p141_p9), 5, %v179_v5  ;;  %v255_v8 = vsub.s32 (!%p141_p9), 3, %v179_v5  ;;  %v259_v9 = vsub.s32 (!%p141_p9), 7, %v179_v5  ;;  %s412_s20 = scalar_lea.vmem (!%p141_p9), %s567_s10, 256  ;;  %s478_s24 = smov (!%p141_p9), [#allocation2]  }
  0x12   : > { %v180_v10 = vsub.s32 (!%p141_p9), 0, %v179_v5  ;;  %v184_v11 = vsub.s32 (!%p141_p9), 4, %v179_v5  ;;  %v233_v12 = vsub.s32 (!%p141_p9), 2, %v179_v5  ;;  %v237_v13 = vsub.s32 (!%p141_p9), 6, %v179_v5  ;;  %p413_p11 = scmp.ne.s32.totalorder (!%p141_p9), %s567_s10, %s412_s20  ;;  %s416_s25 = sshll.u32 (!%p141_p9), %s478_s24, 4  ;;  %s417_s25 = int_to_ptr.vmem [resolvable:$false] %s416_s25 }
  0x13   : > { %200 = vperm.xlu0 (!%p141_p9), %409, %v171_v3   ;;  %s418_s26 = scalar_lea.vmem (!%p141_p9), %s417_s25, 512  ;;  %p419_p0 = scmp.lt.s32.totalorder (!%p141_p9), %s567_s10, %s417_s25 }
  0x14   : > { %p414_p12 = pnand (!%p141_p9), %p413_p11, %p537_p5  ;;  %p420_p1 = scmp.lt.s32.totalorder (!%p141_p9), %s418_s26, %s412_s20 }
  0x15   : > { %s165_s28 = scalar_select %p164_p10, %s520_s16, 1 }
  0x16   : > { %s281_s16 = scalar_lea.sflag [#allocation3], %s161_s6  ;;  %p415_p13 = pneg %p414_p12 }
  0x17   : > { %411 = vset.pattern.permute.xlu0 %v477_v2  ;;  %s366_s29 = sshll.u32 %s165_s28, 3  ;;  %p421_p2 = por %p420_p1, %p419_p0 }
  0x18   : > { %s168_s5 = scalar_lea.vmem %s609_s0, %s366_s29 }
  0x19   : > { %v169_v14 = vld [vmem:[%s168_s5] sm:$0xff]  ;;  %p422_p3 = pnand %p421_p2, %p415_p13 }
  0x1a   : > { %v212_v15 = vrot.slane %v169_v14, %v211_v6  ;;  %v216_v16 = vrot.slane %v169_v14, %v215_v7  ;;  %v256_v17 = vrot.slane %v169_v14, %v255_v8  ;;  %v260_v18 = vrot.slane %v169_v14, %v259_v9 }
  0x1b   : > { %v181_v19 = vrot.slane %v169_v14, %v180_v10  ;;  %v185_v20 = vrot.slane %v169_v14, %v184_v11  ;;  %v234_v21 = vrot.slane %v169_v14, %v233_v12  ;;  %v238_v22 = vrot.slane %v169_v14, %v237_v13 }
  0x1c   : > { %v222_v23 = vrot.slane %v212_v15, %v211_v6  ;;  %v226_v24 = vrot.slane %v216_v16, %v211_v6  ;;  %v266_v25 = vrot.slane %v256_v17, %v255_v8  ;;  %v270_v26 = vrot.slane %v260_v18, %v255_v8 }
  0x1d   : > { %v191_v27 = vrot.slane %v181_v19, %v180_v10  ;;  %v195_v28 = vrot.slane %v185_v20, %v180_v10  ;;  %v244_v29 = vrot.slane %v234_v21, %v233_v12  ;;  %v248_v30 = vrot.slane %v238_v22, %v233_v12 }
  0x8e   : > { %v175_v31 = vpop.permute.xlu0 %174  ;;  %v207_v32 = vpop.permute.xlu1 %206 }
  0x8f   : > { %v227_v33 = vmul.f32 %v222_v23, %v207_v32  ;;  %v228_v34 = vmul.f32 %v226_v24, %v207_v32  ;;  %v271_v35 = vmul.f32 %v266_v25, %v207_v32  ;;  %v272_v36 = vmul.f32 %v270_v26, %v207_v32 }
  0x90   : > { %v196_v37 = vmul.f32 %v191_v27, %v175_v31  ;;  %v197_v38 = vmul.f32 %v195_v28, %v175_v31  ;;  %v249_v39 = vmul.f32 %v244_v29, %v175_v31  ;;  %v250_v40 = vmul.f32 %v248_v30, %v175_v31 }
  0x92   : > { %v201_v41 = vpop.permute.xlu0 %200 }
  0x93   : > { %v203_v42 = vadd.f32 %v201_v41, %v196_v37  ;;  %v204_v43 = vadd.f32 %v201_v41, %v197_v38  ;;  %v251_v44 = vadd.f32 %v249_v39, %v201_v41  ;;  %v252_v45 = vadd.f32 %v250_v40, %v201_v41 }
  0x95   : > { %v229_v46 = vadd.f32 %v227_v33, %v203_v42  ;;  %v230_v47 = vadd.f32 %v228_v34, %v204_v43  ;;  %v273_v48 = vadd.f32 %v271_v35, %v251_v44  ;;  %v274_v49 = vadd.f32 %v272_v36, %v252_v45 }
  0x97   : > { %v276_v50 = vsel %vm275_vm0, %v229_v46, %v273_v48  ;;  %v277_v51 = vsel %vm275_vm0, %v230_v47, %v274_v49 }
  0x98   : > { %278 = vst [vmem:[%s163_s9] sm:$0xff] %v276_v50  ;;  %279 = vst [vmem:[%s163_s9 + $0x8] sm:$0xff] %v277_v51 }
  0x99   : > { %425 = shalt.err (!%p422_p3)
}
  0x9a   : > { %s426_s27 = scalar_lea.hbm %s565_s19, 256  ;;  %s430_s30 = scalar_lea.hbm %s612_s3, 512 }
  0x9b   : > { %p427_p4 = scmp.ne.s32.totalorder %s565_s19, %s426_s27  ;;  %p431_p9 = scmp.lt.u32.totalorder %s565_s19, %s612_s3 }
  0x9c   : > { %p432_p10 = scmp.lt.u32.totalorder %s430_s30, %s426_s27  ;;  %p434_p12 = scmp.lt.u32.totalorder %s426_s27, %s565_s19 }
  0x9d   : > { %p428_p7 = pnand %p427_p4, %p537_p5 }
  0x9e   : > { %p433_p11 = por %p432_p10, %p431_p9 }
  0x9f   : > { %p429_p8 = pneg %p428_p7 }
  0xa0   : > { %p435_p13 = por %p434_p12, %p433_p11 }
  0xa2   : > { %p436_p0 = pnand %p435_p13, %p429_p8 }
  0xa4   : > { %439 = shalt.err (!%p436_p0)
}
  0xa5   : > { %368 = dma.vmem_to_hbm [thread:$0]  (%p537_p5), %s567_s10, 256, %s565_s19, %s281_s16  }
  0xa6 PF: > { %p374_p1 = scmp.ge.s32.totalorder %s474_s15, 2  ;;  %s307_s6 = sand.u32 1, %s462_s12  }
  0xa7   : > { %s308_s7 = scalar_lea.sflag [#allocation3], %s307_s6 }
  0xa8   : > { %p371_p2 = pnand %p374_p1, %p541_p6 }
  0xaa   : > { %457 = dma.done.wait (!%p371_p2), %s308_s7, 256  }
  0xab   : > { %459 = vsyncadd (!%p371_p2), %s308_s7, 4294967040  ;;  %p13_p3 = scmp.ge.s32.totalorder %s524_s18, 4   ;;  %s615_s12 = smov %s466_s13 }
  0xac   : > { %s616_s13 = smov %s470_s14  ;;  %s617_s14 = smov %s535_s21 }
  0xad   : > { %s618_s15 = smov %s524_s18  ;;  %15 = sbr.rel (!%p13_p3) target bundleno = 3 (0x3), region = 67 }
  0xb4   :  { %313 = vsyncpa [#allocation3], 1 }
  0xb5   :  { %315 = vsyncpa [#allocation3 + $0x1], 1 }

</bundles_post_ra>
